<compile_context>
chip_gen: v7x
topology: tpu7x:2x2x1
jax: 0.10.0
libtpu: 0.0.40
codegen_flags: <defaults>
</compile_context>

<pallas_src>
import functools

import jax
import jax.numpy as jnp
from jax.experimental import pallas as pl
from jax.experimental.pallas import tpu as pltpu

OUT_PAD = 128          # lane-dense padded width of the fc2 output
NEG_BIG = -1e30        # padded-logit bias -> exp underflows to exactly 0


def _round_up(x, m):
    return ((x + m - 1) // m) * m


def mlp_softmax_kernel(x_ref, w1_ref, b1_ref, w2_ref, b2_ref, o_ref):
    # fc1 + ReLU (MXU, f32 accumulation; bias add & ReLU in f32)
    x = x_ref[...]
    h = jnp.dot(x, w1_ref[...], preferred_element_type=jnp.float32) + b1_ref[...]
    h = jnp.maximum(h, 0.0)

    # fc2 into a lane-dense 128-wide padded output. Padded weight columns are 0
    # and padded bias columns are NEG_BIG, so padded logits vanish after softmax.
    logits = jnp.dot(h.astype(w2_ref.dtype), w2_ref[...],
                     preferred_element_type=jnp.float32) + b2_ref[...]

    # Numerically stable softmax with an exact divide (matches jax.nn.softmax;
    # the approx reciprocal was the source of the previous accuracy failure and
    # buys nothing here since the kernel is memory-bound).
    m = jnp.max(logits, axis=-1, keepdims=True)
    e = jnp.exp(logits - m)
    denom = jnp.sum(e, axis=-1, keepdims=True)
    o_ref[...] = (e / denom).astype(o_ref.dtype)


@functools.partial(jax.jit, static_argnames=("tile_b", "compute_dtype"))
def neural_net_forward(x, w1, b1, w2, b2, *, tile_b=512, compute_dtype=jnp.float32):
    """x: (B, 34) float32 -> (B, 3) float32 softmax probabilities.

    Weights stored transposed relative to nn.Linear: w1 (34, 256), w2 (256, 3).
    `compute_dtype=jnp.bfloat16` casts the MXU inputs only (use on v6e/v7x).
    """
    B, in1 = x.shape
    out1 = w1.shape[1]
    out2 = w2.shape[1]

    # Batch tile: multiple of 8, never larger than the (rounded-up) batch.
    tile_b = max(8, min(int(tile_b), _round_up(B, 8)))
    tile_b = _round_up(tile_b, 8)
    B_pad = _round_up(B, tile_b)
    if B_pad != B:
        x = jnp.pad(x, ((0, B_pad - B), (0, 0)))

    # Lane-dense fc2: zero-pad weights, NEG_BIG-pad bias for the fake columns.
    w2p = jnp.pad(w2, ((0, 0), (0, OUT_PAD - out2)))
    b2p = jnp.pad(b2.reshape(1, out2), ((0, 0), (0, OUT_PAD - out2)),
                  constant_values=NEG_BIG)
    b1_2d = b1.reshape(1, out1)

    # Optional bf16 cast of MXU operands only; biases / softmax stay f32.
    x_c = x.astype(compute_dtype)
    w1_c = w1.astype(compute_dtype)
    w2_c = w2p.astype(compute_dtype)

    grid = (B_pad // tile_b,)
    out = pl.pallas_call(
        mlp_softmax_kernel,
        out_shape=jax.ShapeDtypeStruct((B_pad, OUT_PAD), jnp.float32),
        grid=grid,
        in_specs=[
            pl.BlockSpec((tile_b, in1), lambda i: (i, 0)),     # x tile (pipelined)
            pl.BlockSpec((in1, out1), lambda i: (0, 0)),       # W1 resident
            pl.BlockSpec((1, out1), lambda i: (0, 0)),         # b1 resident
            pl.BlockSpec((out1, OUT_PAD), lambda i: (0, 0)),   # W2 (padded) resident
            pl.BlockSpec((1, OUT_PAD), lambda i: (0, 0)),      # b2 (padded) resident
        ],
        out_specs=pl.BlockSpec((tile_b, OUT_PAD), lambda i: (i, 0)),
        compiler_params=pltpu.CompilerParams(
            dimension_semantics=("parallel",)),                # megacore split on v7x
    )(x_c, w1_c, b1_2d, w2_c, b2p)

    return out[:B, :out2]


def init_params(key):
    """Deterministic synthetic parameters with nn.Linear shapes (stored transposed)."""
    k1, k2, k3, k4 = jax.random.split(key, 4)
    # fc1: Linear(34, 256)  -> w1 (34, 256), b1 (256,)
    w1 = jax.random.normal(k1, (34, 256), dtype=jnp.float32) * (1.0 / jnp.sqrt(34.0))
    b1 = jax.random.normal(k2, (256,), dtype=jnp.float32) * 0.01
    # fc2: Linear(256, 3)   -> w2 (256, 3), b2 (3,)
    w2 = jax.random.normal(k3, (256, 3), dtype=jnp.float32) * (1.0 / jnp.sqrt(256.0))
    b2 = jax.random.normal(k4, (3,), dtype=jnp.float32) * 0.01
    return w1, b1, w2, b2


def reference_forward(x, w1, b1, w2, b2):
    # True-f32 reference: force HIGHEST precision so the XLA default (reduced
    # precision f32 matmul on TPU) doesn't create a spurious mismatch vs the
    # kernel's f32 MXU path.
    hp = jax.lax.Precision.HIGHEST
    h = jnp.maximum(jnp.dot(x, w1, precision=hp) + b1, 0.0)
    logits = jnp.dot(h, w2, precision=hp) + b2
    return jax.nn.softmax(logits, axis=-1)


if __name__ == "__main__":
    key = jax.random.PRNGKey(0)
    kx, kp = jax.random.split(key)
    w1, b1, w2, b2 = init_params(kp)

    # Small batch (single grid step).
    B = 8
    x = jax.random.normal(kx, (B, 34), dtype=jnp.float32)
    out = jax.block_until_ready(neural_net_forward(x, w1, b1, w2, b2))
    ref = reference_forward(x, w1, b1, w2, b2)
    assert out.shape == (B, 3)
    assert jnp.allclose(out, ref, atol=2e-4, rtol=2e-4), "f32 mismatch vs reference"
    assert jnp.allclose(jnp.sum(out, axis=-1), 1.0, atol=1e-4), "rows must sum to 1"

    # Larger batch: multiple grid steps + tail padding (B not a multiple of tile_b).
    B2 = 1000
    x2 = jax.random.normal(kx, (B2, 34), dtype=jnp.float32)
    out2 = jax.block_until_ready(neural_net_forward(x2, w1, b1, w2, b2, tile_b=512))
    ref2 = reference_forward(x2, w1, b1, w2, b2)
    assert out2.shape == (B2, 3)
    assert jnp.allclose(out2, ref2, atol=2e-4, rtol=2e-4), "tiled f32 mismatch"
    assert jnp.allclose(jnp.sum(out2, axis=-1), 1.0, atol=1e-4)

    # bf16 MXU-input variant (v6e/v7x): halves HBM traffic for x, f32 accumulation,
    # f32 softmax -> rows still sum to 1; logits carry bf16-level error so use a
    # loose tolerance against the f32 reference.
    out_bf16 = jax.block_until_ready(
        neural_net_forward(x2, w1, b1, w2, b2, tile_b=512, compute_dtype=jnp.bfloat16))
    assert out_bf16.shape == (B2, 3)
    assert jnp.allclose(out_bf16, ref2, atol=5e-2, rtol=5e-2), "bf16 variant too far off"
    assert jnp.allclose(jnp.sum(out_bf16, axis=-1), 1.0, atol=1e-3)

    print("KERNEL_OK")
</pallas_src>

<mosaic_0001>
module attributes {stable_mosaic.version = 11 : i64} {
  func.func @mlp_softmax_kernel(%arg0: i32, %arg1: memref<8x34xf32, #tpu.memory_space<vmem>>, %arg2: memref<34x256xf32, #tpu.memory_space<vmem>>, %arg3: memref<1x256xf32, #tpu.memory_space<vmem>>, %arg4: memref<256x128xf32, #tpu.memory_space<vmem>>, %arg5: memref<1x128xf32, #tpu.memory_space<vmem>>, %arg6: memref<8x128xf32, #tpu.memory_space<vmem>>) attributes {dimension_semantics = [#tpu.dimension_semantics<parallel>], iteration_bounds = array<i64: 1>, scalar_prefetch = 0 : i64, scratch_operands = 0 : i64, tpu.core_type = #tpu.core_type<tc>, window_params = [{transform_indices = @transform_0, window_bounds = array<i64: 8, 34>}, {pipeline_mode = #tpu.pipeline_mode<synchronous>, transform_indices = @transform_1, window_bounds = array<i64: 34, 256>}, {pipeline_mode = #tpu.pipeline_mode<synchronous>, transform_indices = @transform_2, window_bounds = array<i64: 1, 256>}, {pipeline_mode = #tpu.pipeline_mode<synchronous>, transform_indices = @transform_3, window_bounds = array<i64: 256, 128>}, {pipeline_mode = #tpu.pipeline_mode<synchronous>, transform_indices = @transform_4, window_bounds = array<i64: 1, 128>}, {transform_indices = @transform_5, window_bounds = array<i64: 8, 128>}]} {
    %c0 = arith.constant 0 : index
    %c0_0 = arith.constant 0 : index
    %0 = vector.load %arg1[%c0, %c0_0] : memref<8x34xf32, #tpu.memory_space<vmem>>, vector<8x34xf32>
    %c0_1 = arith.constant 0 : index
    %c0_2 = arith.constant 0 : index
    %1 = vector.load %arg2[%c0_1, %c0_2] : memref<34x256xf32, #tpu.memory_space<vmem>>, vector<34x256xf32>
    %cst = arith.constant dense<0.000000e+00> : vector<8x256xf32>
    %2 = tpu.matmul %0, %1, %cst {dimension_numbers = #tpu.dot_dimension_numbers<[1], [0], [0], [1], [0, 0, 1, 1], [], []>} : vector<8x34xf32>, vector<34x256xf32>, vector<8x256xf32> -> vector<8x256xf32>
    %c0_3 = arith.constant 0 : index
    %c0_4 = arith.constant 0 : index
    %3 = vector.load %arg3[%c0_3, %c0_4] : memref<1x256xf32, #tpu.memory_space<vmem>>, vector<1x256xf32>
    %4 = vector.broadcast %3 : vector<1x256xf32> to vector<8x256xf32>
    %5 = arith.addf %2, %4 : vector<8x256xf32>
    %cst_5 = arith.constant 0.000000e+00 : f32
    %6 = vector.broadcast %cst_5 : f32 to vector<8x256xf32>
    %7 = arith.maximumf %5, %6 : vector<8x256xf32>
    %c0_6 = arith.constant 0 : index
    %c0_7 = arith.constant 0 : index
    %8 = vector.load %arg4[%c0_6, %c0_7] : memref<256x128xf32, #tpu.memory_space<vmem>>, vector<256x128xf32>
    %cst_8 = arith.constant dense<0.000000e+00> : vector<8x128xf32>
    %9 = tpu.matmul %7, %8, %cst_8 {dimension_numbers = #tpu.dot_dimension_numbers<[1], [0], [0], [1], [0, 0, 1, 1], [], []>} : vector<8x256xf32>, vector<256x128xf32>, vector<8x128xf32> -> vector<8x128xf32>
    %c0_9 = arith.constant 0 : index
    %c0_10 = arith.constant 0 : index
    %10 = vector.load %arg5[%c0_9, %c0_10] : memref<1x128xf32, #tpu.memory_space<vmem>>, vector<1x128xf32>
    %11 = vector.broadcast %10 : vector<1x128xf32> to vector<8x128xf32>
    %12 = arith.addf %9, %11 : vector<8x128xf32>
    %cst_11 = arith.constant dense<0xFF800000> : vector<8xf32>
    %13 = vector.multi_reduction <maximumf>, %12, %cst_11 [1] : vector<8x128xf32> to vector<8xf32>
    %14 = vector.shape_cast %13 : vector<8xf32> to vector<8x1xf32>
    %15 = vector.broadcast %14 : vector<8x1xf32> to vector<8x128xf32>
    %16 = arith.subf %12, %15 : vector<8x128xf32>
    %17 = math.exp %16 : vector<8x128xf32>
    %cst_12 = arith.constant dense<0.000000e+00> : vector<8xf32>
    %18 = vector.multi_reduction <add>, %17, %cst_12 [1] : vector<8x128xf32> to vector<8xf32>
    %19 = vector.shape_cast %18 : vector<8xf32> to vector<8x1xf32>
    %20 = vector.broadcast %19 : vector<8x1xf32> to vector<8x128xf32>
    %21 = arith.divf %17, %20 : vector<8x128xf32>
    %c0_13 = arith.constant 0 : index
    %c0_14 = arith.constant 0 : index
    %22 = vector.load %arg6[%c0_13, %c0_14] : memref<8x128xf32, #tpu.memory_space<vmem>>, vector<8x128xf32>
    tpu.vector_store %arg6[%c0_13, %c0_14], %21 {strides = array<i32>} : memref<8x128xf32, #tpu.memory_space<vmem>>, vector<8x128xf32>,
    return
  }
  func.func @transform_0(%arg0: i32) -> (i32, i32) {
    %c0_i32 = arith.constant 0 : i32
    %c0_i32_0 = arith.constant 0 : i32
    return %arg0, %c0_i32 : i32, i32
  }
  func.func @transform_1(%arg0: i32) -> (i32, i32) {
    %c0_i32 = arith.constant 0 : i32
    %c0_i32_0 = arith.constant 0 : i32
    %c0_i32_1 = arith.constant 0 : i32
    return %c0_i32, %c0_i32_0 : i32, i32
  }
  func.func @transform_2(%arg0: i32) -> (i32, i32) {
    %c0_i32 = arith.constant 0 : i32
    %c0_i32_0 = arith.constant 0 : i32
    %c0_i32_1 = arith.constant 0 : i32
    return %c0_i32, %c0_i32_0 : i32, i32
  }
  func.func @transform_3(%arg0: i32) -> (i32, i32) {
    %c0_i32 = arith.constant 0 : i32
    %c0_i32_0 = arith.constant 0 : i32
    %c0_i32_1 = arith.constant 0 : i32
    return %c0_i32, %c0_i32_0 : i32, i32
  }
  func.func @transform_4(%arg0: i32) -> (i32, i32) {
    %c0_i32 = arith.constant 0 : i32
    %c0_i32_0 = arith.constant 0 : i32
    %c0_i32_1 = arith.constant 0 : i32
    return %c0_i32, %c0_i32_0 : i32, i32
  }
  func.func @transform_5(%arg0: i32) -> (i32, i32) {
    %c0_i32 = arith.constant 0 : i32
    %c0_i32_0 = arith.constant 0 : i32
    return %arg0, %c0_i32 : i32, i32
  }
}

</mosaic_0001>

<bundles_post_ra>
// kernel: neural_net_forward.1
= control target key start
LH: loop header
LB: loop body
LE: loop exit
PB: predicated region body
PF: predicated region fallthrough
CT: control target
= control target key end

     0   :  { %v334_v3 = vmov 0.0   ;;  %vm47_vm0 = vcmask 1041408   ;;  %vm43_vm1 = vcmask 277504   ;;  %s505_s1 = inlined_call_operand.vmem [shape: f32[34,256], index: 1, kind: input, shape index: {}]   ;;  %s506_s3 = inlined_call_operand.vmem [shape: f32[256,128], index: 3, kind: input, shape index: {}]   ;;  %s507_s0 = inlined_call_operand.vmem [shape: f32[8,34], index: 0, kind: input, shape index: {}]   ;;  %s508_s2 = inlined_call_operand.vmem [shape: f32[1,256], index: 2, kind: input, shape index: {}]   ;;  %s509_s4 = inlined_call_operand.vmem [shape: f32[1,128], index: 4, kind: input, shape index: {}]   ;;  %s510_s5 = inlined_call_operand.vmem [shape: f32[8,128], index: 5, kind: output, shape index: {}]  }
   0x1   :  { %v22_v0 = vld [vmem:[%s505_s1 + $0x8] sm:$0xff]  ;;  %v24_v1 = vld [vmem:[%s505_s1 + $0x18] sm:$0xff]  ;;  %v21_v2 = vld [vmem:[%s505_s1] sm:$0xff]  ;;  %118 = vmatprep.mubr.f32.mxu0 %v334_v3 }
   0x2   :  { %v289_v4 = vpack.c.bf16 %v24_v1, %v22_v0  ;;  %v23_v5 = vld [vmem:[%s505_s1 + $0x10] sm:$0xff]  ;;  %v26_v6 = vld [vmem:[%s505_s1 + $0x28] sm:$0xff]  ;;  %v28_v7 = vld [vmem:[%s505_s1 + $0x38] sm:$0xff]  ;;  %v33_v0 = vlaneseq }
   0x3   :  { %v291_v8 = vpack.c.bf16 %v23_v5, %v21_v2  ;;  %v293_v9 = vpack.c.bf16 %v28_v7, %v26_v6  ;;  %v25_v10 = vld [vmem:[%s505_s1 + $0x20] sm:$0xff]  ;;  %v27_v11 = vld [vmem:[%s505_s1 + $0x30] sm:$0xff]  ;;  %v30_v14 = vld [vmem:[%s505_s1 + $0x48] sm:$0x3] }
   0x4   :  { %290 = vmatprep.subr.bf16.mxu0 %v289_v4  ;;  %v143_v12 = vld [vmem:[%s506_s3 + $0x80] sm:$0xff]  ;;  %v295_v13 = vpack.c.bf16 %v27_v11, %v25_v10  ;;  %v144_v15 = vld [vmem:[%s506_s3 + $0x88] sm:$0xff]  ;;  %v145_v20 = vld [vmem:[%s506_s3 + $0x90] sm:$0xff]  ;;  %v34_v1 = vshrl.u32 %v33_v0, 7 }
   0x5   :  { %292 = vmatpush1.bf16.msra.mxu0 %v291_v8  ;;  %v127_v16 = vld [vmem:[%s506_s3] sm:$0xff]  ;;  %v128_v17 = vld [vmem:[%s506_s3 + $0x8] sm:$0xff]  ;;  %v297_v18 = vpack.c.bf16 %v144_v15, %v143_v12  ;;  %v146_v21 = vld [vmem:[%s506_s3 + $0x98] sm:$0xff] }
   0x6   :  { %294 = vmatprep.subr.bf16.mxu0 %v293_v9  ;;  %v299_v19 = vpack.c.bf16 %v128_v17, %v127_v16  ;;  %v129_v22 = vld [vmem:[%s506_s3 + $0x10] sm:$0xff]  ;;  %v301_v23 = vpack.c.bf16 %v146_v21, %v145_v20  ;;  %v130_v24 = vld [vmem:[%s506_s3 + $0x18] sm:$0xff]  ;;  %v147_v25 = vld [vmem:[%s506_s3 + $0xa0] sm:$0xff]  ;;  %v35_v2 = vsub.s32 0, %v34_v1  ;;  %v39_v4 = vsub.s32 1, %v34_v1 }
   0x7   :  { %v148_v26 = vld [vmem:[%s506_s3 + $0xa8] sm:$0xff]  ;;  %298 = vmatprep.subr.bf16.mxu1 %v297_v18  ;;  %v303_v27 = vpack.c.bf16 %v130_v24, %v129_v22  ;;  %v29_v28 = vld [vmem:[%s505_s1 + $0x40] sm:$0x3]  ;;  %v149_v33 = vld [vmem:[%s506_s3 + $0xb0] sm:$0xff] }
   0x8   :  { %300 = vmatpush3.bf16.msra.mxu1 %v299_v19  ;;  %v305_v29 = vpack.c.bf16 %v148_v26, %v147_v25  ;;  %v131_v30 = vld [vmem:[%s506_s3 + $0x20] sm:$0xff]  ;;  %v132_v31 = vld [vmem:[%s506_s3 + $0x28] sm:$0xff]  ;;  %v150_v34 = vld [vmem:[%s506_s3 + $0xb8] sm:$0xff] }
   0x9   :  { %296 = vmatpush1.bf16.msra.mxu0 %v295_v13  ;;  %302 = vmatprep.subr.bf16.mxu1 %v301_v23  ;;  %v20_v32 = vld [vmem:[%s507_s0] sm:$0xff]  ;;  %v307_v35 = vpack.c.bf16 %v132_v31, %v131_v30  ;;  %v309_v36 = vpack.c.bf16 %v150_v34, %v149_v33  ;;  %v133_v37 = vld [vmem:[%s506_s3 + $0x30] sm:$0xff]  ;;  %v134_v38 = vld [vmem:[%s506_s3 + $0x38] sm:$0xff] }
   0xa   :  { %250 = vmatprep.subr.msk.mxu0 %vm47_vm0, %v30_v14  ;;  %v151_v39 = vld [vmem:[%s506_s3 + $0xc0] sm:$0xff]  ;;  %v152_v40 = vld [vmem:[%s506_s3 + $0xc8] sm:$0xff]  ;;  %v311_v41 = vpack.c.bf16 %v134_v38, %v133_v37  ;;  %v153_v45 = vld [vmem:[%s506_s3 + $0xd0] sm:$0xff] }
   0xb   :  { %v313_v42 = vpack.c.bf16 %v152_v40, %v151_v39  ;;  %v135_v43 = vld [vmem:[%s506_s3 + $0x40] sm:$0xff]  ;;  %v136_v44 = vld [vmem:[%s506_s3 + $0x48] sm:$0xff]  ;;  %v154_v46 = vld [vmem:[%s506_s3 + $0xd8] sm:$0xff] }
   0xc   :  { %304 = vmatpush3.bf16.msra.mxu1 %v303_v27  ;;  %v315_v47 = vpack.c.bf16 %v136_v44, %v135_v43  ;;  %v317_v48 = vpack.c.bf16 %v154_v46, %v153_v45  ;;  %v137_v49 = vld [vmem:[%s506_s3 + $0x50] sm:$0xff]  ;;  %v138_v50 = vld [vmem:[%s506_s3 + $0x58] sm:$0xff]  ;;  %v155_v51 = vld [vmem:[%s506_s3 + $0xe0] sm:$0xff] }
   0xd   :  { %251 = vmatpush1.msk.msra.mxu0 %vm47_vm0, %v29_v28  ;;  %306 = vmatprep.subr.bf16.mxu1 %v305_v29  ;;  %v156_v52 = vld [vmem:[%s506_s3 + $0xe8] sm:$0xff]  ;;  %v319_v53 = vpack.c.bf16 %v138_v50, %v137_v49  ;;  %v139_v55 = vld [vmem:[%s506_s3 + $0x60] sm:$0xff]  ;;  %v157_v58 = vld [vmem:[%s506_s3 + $0xf0] sm:$0xff] }
   0xe   :  { %252 = vmatmul.mubr.msk.f32.vlgmr.msra.gmra.mrb[0].mxu0 %vm43_vm1, %v20_v32  ;;  %v321_v54 = vpack.c.bf16 %v156_v52, %v155_v51  ;;  %v140_v56 = vld [vmem:[%s506_s3 + $0x68] sm:$0xff]  ;;  %v158_v59 = vld [vmem:[%s506_s3 + $0xf8] sm:$0xff]  ;;  %v141_v61 = vld [vmem:[%s506_s3 + $0x70] sm:$0xff] }
   0xf   :  { %v323_v57 = vpack.c.bf16 %v140_v56, %v139_v55  ;;  %v325_v60 = vpack.c.bf16 %v158_v59, %v157_v58  ;;  %v142_v62 = vld [vmem:[%s506_s3 + $0x78] sm:$0xff]  ;;  %v31_v3 = vld [vmem:[%s508_s2] sm:$0x3] }
  0x10   :  { %308 = vmatpush3.bf16.msra.mxu1 %v307_v35  ;;  %v327_v63 = vpack.c.bf16 %v142_v62, %v141_v61  ;;  %v36_v5 = vrot.slane %v31_v3, %v35_v2  ;;  %v40_v6 = vrot.slane %v31_v3, %v39_v4  ;;  %v253_v15 = vld [vmem:[%s509_s4] ss:$0 sm:$0xff] }
  0x11   :  { %310 = vmatprep.subr.bf16.mxu1 %v309_v36 }
  0x14   :  { %312 = vmatpush3.bf16.msra.mxu1 %v311_v41 }
  0x15   :  { %314 = vmatprep.subr.bf16.mxu1 %v313_v42 }
  0x18   :  { %316 = vmatpush3.bf16.msra.mxu1 %v315_v47 }
  0x19   :  { %318 = vmatprep.subr.bf16.mxu1 %v317_v48 }
  0x1c   :  { %320 = vmatpush3.bf16.msra.mxu1 %v319_v53 }
  0x1d   :  { %322 = vmatprep.subr.bf16.mxu1 %v321_v54 }
  0x20   :  { %324 = vmatpush3.bf16.msra.mxu1 %v323_v57 }
  0x21   :  { %326 = vmatprep.subr.bf16.mxu1 %v325_v60 }
  0x24   :  { %328 = vmatpush3.bf16.msra.mxu1 %v327_v63 }
  0xe1   :  { %v120_v7 = vpop.f32.mrb[0].mxu0 }
  0xe2   :  { %v121_v8 = vadd.f32 %v120_v7, %v36_v5  ;;  %v122_v9 = vpop.f32.mrb[1].mxu0 }
  0xe3   :  { %v123_v10 = vadd.f32 %v122_v9, %v40_v6 }
  0xe4   :  { %v125_v12 = vmax.f32 %v121_v8, 0.0 }
  0xe5   :  { %v126_v11 = vmax.f32 %v123_v10, 0.0 }
  0xe7   :  { %230 = vmatprep.mubr.f32.mxu1 %v126_v11 }
  0xe8   :  { %231 = vmatmul.mubr.f32.vlgmr.msra.gmra.mrb[0].mxu1 %v125_v12 }
 0x1bb   :  { %v286_v13 = vpop.f32.mrb[0].mxu1 }
 0x1bc   :  { %v287_v14 = vpop.f32.mrb[1].mxu1 }
 0x1bd   :  { %v288_v16 = vadd.f32 %v287_v14, %v286_v13 }
 0x1bf   :  { %v233_v17 = vadd.f32 %v288_v16, %v253_v15 }
 0x1c1   :  { %236 = vmax.xlane.f32.xlu0 %v233_v17 }
 0x24e   :  { %v237_v18 = vpop.xlane.xlu0 %236 }
 0x24f   :  { %v238_v19 = vsub.f32 %v233_v17, %v237_v18 }
 0x251   :  { %v239_v20 = vmul.f32 1.442695, %v238_v19 }
 0x253   :  { %330 = vpow2.f32 %v239_v20 }
 0x25d   :  { %v331_v21 = vpop.eup %330 }
 0x25e   :  { %241 = vadd.xlane.f32.xlu0 %v331_v21 }
 0x2eb   :  { %v242_v22 = vpop.xlane.xlu0 %241 }
 0x2ec   :  { %332 = vrcp.f32 %v242_v22 }
 0x2f6   :  { %v333_v23 = vpop.eup %332 }
 0x2f7   :  { %v244_v24 = vmul.f32 %v333_v23, %v331_v21 }
 0x2f9   :  { %245 = vst [vmem:[%s510_s5] sm:$0xff] %v244_v24 }

</bundles_post_ra>
